<compile_context>
chip_gen: v7x
topology: tpu7x:2x2x1
jax: 0.10.0
libtpu: 0.0.40
codegen_flags: <defaults>
</compile_context>

<pallas_src>
import functools

import jax
import jax.numpy as jnp
from jax import lax
from jax.experimental import pallas as pl
from jax.experimental.pallas import tpu as pltpu


def _tri_pairs(c):
    return [(i, j) for i in range(c) for j in range(i + 1)]


def _map_loss_kernel(t_ref, m_ref, s_ref, sum_ref, max_ref, *,
                     c, sub, cr, nfull, rem, mn, need_mask, unroll):
    """Per-lane Cholesky solve of sigma @ x = (target - mu) on (cr,128) chunks.

    t_ref, m_ref : (1, c,    sub, 128)  raw-layout target / mu blocks
    s_ref        : (ntri, 1, sub, 128)  lower-tri sigma entries (row k = tri[k])
    sum_ref/max_ref : (1, cr, 128)      per-batch resident accumulators
    Assumes per-pixel sigma_y is SPD (same assumption as torch.inverse/det).
    """
    ti = pl.program_id(1)

    @pl.when(ti == 0)
    def _():
        sum_ref[...] = jnp.zeros_like(sum_ref)
        max_ref[...] = jnp.zeros_like(max_ref)

    tri = _tri_pairs(c)
    tri_idx = {p: k for k, p in enumerate(tri)}
    tile_pix0 = ti * (sub * 128)        # first pixel (within this image) of tile

    def piece(rows, off, pix):
        """Return (quad + logdet, quad) for `rows` rows at row offset `off`."""
        d = [t_ref[0, k, pl.ds(off, rows), :] - m_ref[0, k, pl.ds(off, rows), :]
             for k in range(c)]
        A = {(i, j): s_ref[tri_idx[(i, j)], 0, pl.ds(off, rows), :]
             for (i, j) in tri}

        # Lane-parallel Cholesky, fully unrolled over the c x c matrix.
        L = {}
        inv = [None] * c
        diag_prod = None                 # prod of pivots -> single log below
        for jj in range(c):
            s_jj = A[(jj, jj)]
            for kk in range(jj):
                s_jj = s_jj - L[(jj, kk)] * L[(jj, kk)]
            inv[jj] = lax.rsqrt(s_jj)                     # EUP slot
            diag_prod = s_jj if diag_prod is None else diag_prod * s_jj
            for i in range(jj + 1, c):
                v = A[(i, jj)]
                for kk in range(jj):
                    v = v - L[(i, kk)] * L[(jj, kk)]
                L[(i, jj)] = v * inv[jj]

        # Forward solve L z = d;  ||z||^2 = d^T sigma^-1 d.
        z = [None] * c
        quad = None
        for i in range(c):
            v = d[i]
            for kk in range(i):
                v = v - L[(i, kk)] * z[kk]
            z[i] = v * inv[i]
            q = z[i] * z[i]
            quad = q if quad is None else quad + q

        contrib = quad + jnp.log(diag_prod)               # one log (EUP slot)
        if need_mask:
            # Mask padded rows/lanes of the ragged tail (garbage in partial
            # blocks / lane padding contributes exactly nothing).
            valid = pix < (mn - (tile_pix0 + off * 128))
            contrib = jnp.where(valid, contrib, 0.0)
            quad = jnp.where(valid, quad, 0.0)
        return contrib, quad

    pix_full = None
    if need_mask:                       # hoisted out of the hot loop
        pix_full = (lax.broadcasted_iota(jnp.int32, (cr, 128), 0) * 128
                    + lax.broadcasted_iota(jnp.int32, (cr, 128), 1))

    def chunk(j, carry):
        s_acc, m_acc = carry
        off = j * cr
        if cr == 8:
            off = pl.multiple_of(off, 8)
        contrib, quad = piece(cr, off, pix_full)
        return s_acc + contrib, jnp.maximum(m_acc, quad)

    s_new, m_new = lax.fori_loop(0, nfull, chunk, (sum_ref[0], max_ref[0]),
                                 unroll=unroll)
    sum_ref[0] = s_new
    max_ref[0] = m_new

    if rem:                              # static ragged inner chunk (< cr rows)
        off = nfull * cr
        pix_rem = None
        if need_mask:
            pix_rem = (lax.broadcasted_iota(jnp.int32, (rem, 128), 0) * 128
                       + lax.broadcasted_iota(jnp.int32, (rem, 128), 1))
        contrib, quad = piece(rem, off, pix_rem)
        sum_ref[0, pl.ds(0, rem), :] = sum_ref[0, pl.ds(0, rem), :] + contrib
        max_ref[0, pl.ds(0, rem), :] = jnp.maximum(
            max_ref[0, pl.ds(0, rem), :], quad)


def map_loss_pretrain(target, mu, sigma_mu, sigma_n, sigma_y, *, sub_rows=1024):
    """Forward pass of MAPLoss_Pretrain (sigma_mu / sigma_n unused, as in torch)."""
    del sigma_mu, sigma_n
    batch, c, m, n = target.shape
    mn = m * n
    P = batch * mn
    tri = _tri_pairs(c)
    ntri = len(tri)

    # Raw layouts; only free (layout-preserving) reshapes.  The diff is
    # computed inside the kernel -> no wrapper transpose pass for target/mu.
    tgt = target.astype(jnp.float32).reshape(batch, c, mn)
    mu_ = mu.astype(jnp.float32).reshape(batch, c, mn)

    # Unique lower-triangular sigma entries, pixel-minor, in ONE fused
    # gather/transpose pass (stack of strided slices; no separate .T, no pad).
    sig4 = sigma_y.astype(jnp.float32).reshape(batch, mn, c, c)
    sig_lo = jnp.stack([sig4[:, :, i, j] for (i, j) in tri], axis=0)  # (ntri,b,mn)

    # Lane padding only if pixels/image is not a multiple of 128 (rare); the
    # row-granularity tail is always handled by the in-kernel mask, not a pad.
    if mn % 128:
        pad = 128 - mn % 128
        tgt = jnp.pad(tgt, ((0, 0), (0, 0), (0, pad)))
        mu_ = jnp.pad(mu_, ((0, 0), (0, 0), (0, pad)))
        sig_lo = jnp.pad(sig_lo, ((0, 0), (0, 0), (0, pad)))
    rows_b = tgt.shape[-1] // 128                    # rows of 128 lanes / image

    tgt = tgt.reshape(batch, c, rows_b, 128)
    mu_ = mu_.reshape(batch, c, rows_b, 128)
    sig_lo = sig_lo.reshape(ntri, batch, rows_b, 128)

    # Row tiling: whole image if it fits (block dim == array dim, always legal)
    # else a multiple-of-8 slab; ragged last tile is masked in-kernel.
    if rows_b <= sub_rows:
        sub = rows_b
    else:
        sub = max(8, sub_rows - sub_rows % 8)
    tiles_b = -(-rows_b // sub)
    cr = 8 if sub >= 8 else sub                      # rows per inner chunk
    nfull, rem = divmod(sub, cr)
    need_mask = tiles_b * sub * 128 > mn

    kernel = functools.partial(
        _map_loss_kernel, c=c, sub=sub, cr=cr, nfull=nfull, rem=rem, mn=mn,
        need_mask=need_mask, unroll=min(2, nfull))

    sum_part, max_part = pl.pallas_call(
        kernel,
        out_shape=(jax.ShapeDtypeStruct((batch, cr, 128), jnp.float32),
                   jax.ShapeDtypeStruct((batch, cr, 128), jnp.float32)),
        grid_spec=pltpu.PrefetchScalarGridSpec(
            num_scalar_prefetch=0,
            grid=(batch, tiles_b),
            in_specs=[
                pl.BlockSpec((1, c, sub, 128), lambda b, t: (b, 0, t, 0)),
                pl.BlockSpec((1, c, sub, 128), lambda b, t: (b, 0, t, 0)),
                pl.BlockSpec((ntri, 1, sub, 128), lambda b, t: (0, b, t, 0)),
            ],
            out_specs=(
                pl.BlockSpec((1, cr, 128), lambda b, t: (b, 0, 0)),
                pl.BlockSpec((1, cr, 128), lambda b, t: (b, 0, 0)),
            )),
        compiler_params=pltpu.CompilerParams(
            dimension_semantics=("parallel", "arbitrary"),
            vmem_limit_bytes=32 * 1024 * 1024),
        cost_estimate=pl.CostEstimate(
            flops=70 * P, transcendentals=5 * P,
            bytes_accessed=(2 * c + ntri) * 4 * P),
    )(tgt, mu_, sig_lo)

    # loss = mean(0.5*quad + 0.5*logdet); the 0.5 is hoisted out of the kernel.
    loss = 0.5 * jnp.sum(sum_part) / jnp.float32(P)
    # PyTorch: if t1.max() > 1e8: loss.data.zero_()   (t1 = 0.5*quad)
    # TODO(synk): .data.zero_() is an autograd-side in-place effect with no
    # functional equivalent; implemented as a value-level select on the forward.
    loss = jnp.where(jnp.max(max_part) > 2e8, jnp.float32(0.0), loss)
    return loss


def _reference(target, mu, sigma_y):
    T = (target - mu).transpose(0, 2, 3, 1)[..., None]          # (b,m,n,c,1)
    inv = jnp.linalg.inv(sigma_y)
    t1 = 0.5 * jnp.squeeze(jnp.swapaxes(T, -1, -2) @ inv @ T, (-1, -2))
    t2 = 0.5 * jnp.log(jnp.linalg.det(sigma_y))
    loss = jnp.mean(t1 + t2)
    return jnp.where(jnp.max(t1) > 1e8, jnp.float32(0.0), loss)


def _make_inputs(key, batch, c, m, n):
    k1, k2, k3 = jax.random.split(key, 3)
    target = jax.random.normal(k1, (batch, c, m, n), jnp.float32)
    mu = jax.random.normal(k2, (batch, c, m, n), jnp.float32)
    A = jax.random.normal(k3, (batch, m, n, c, c), jnp.float32)
    sigma_y = A @ jnp.swapaxes(A, -1, -2) + 0.5 * jnp.eye(c, dtype=jnp.float32)
    sigma_mu = jnp.zeros((batch, m, n, c, c), jnp.float32)   # unused by forward
    sigma_n = jnp.zeros((batch, m, n, c, c), jnp.float32)    # unused by forward
    return target, mu, sigma_mu, sigma_n, sigma_y


if __name__ == "__main__":
    # Main case: batch=2, c=4, 16x16 -> no padding, no masking.
    args = _make_inputs(jax.random.PRNGKey(0), 2, 4, 16, 16)
    loss = jax.block_until_ready(jax.jit(map_loss_pretrain)(*args))
    ref = _reference(args[0], args[1], args[4])
    assert jnp.allclose(loss, ref, rtol=1e-3, atol=1e-4), (loss, ref)

    # Ragged case: 12x12 (144 px/image) -> exercises the in-kernel tail mask.
    args = _make_inputs(jax.random.PRNGKey(1), 2, 4, 12, 12)
    loss = jax.block_until_ready(jax.jit(map_loss_pretrain)(*args))
    ref = _reference(args[0], args[1], args[4])
    assert jnp.allclose(loss, ref, rtol=1e-3, atol=1e-4), (loss, ref)

    # Multi-tile case with a partial last block (mask handles the garbage rows).
    args = _make_inputs(jax.random.PRNGKey(2), 1, 4, 40, 40)
    f = jax.jit(functools.partial(map_loss_pretrain, sub_rows=8))
    loss = jax.block_until_ready(f(*args))
    ref = _reference(args[0], args[1], args[4])
    assert jnp.allclose(loss, ref, rtol=1e-3, atol=1e-4), (loss, ref)

    # Non-multiple-of-8 row count -> exercises the static ragged inner chunk.
    args = _make_inputs(jax.random.PRNGKey(3), 1, 4, 48, 48)
    loss = jax.block_until_ready(jax.jit(map_loss_pretrain)(*args))
    ref = _reference(args[0], args[1], args[4])
    assert jnp.allclose(loss, ref, rtol=1e-3, atol=1e-4), (loss, ref)

    print("KERNEL_OK")
</pallas_src>

<mosaic_0001>
module attributes {stable_mosaic.version = 11 : i64} {
  func.func @_map_loss_kernel(%arg0: i32, %arg1: i32, %arg2: memref<1x4x2x128xf32, #tpu.memory_space<vmem>>, %arg3: memref<1x4x2x128xf32, #tpu.memory_space<vmem>>, %arg4: memref<10x1x2x128xf32, #tpu.memory_space<vmem>>, %arg5: memref<1x2x128xf32, #tpu.memory_space<vmem>>, %arg6: memref<1x2x128xf32, #tpu.memory_space<vmem>>) attributes {dimension_semantics = [#tpu.dimension_semantics<parallel>, #tpu.dimension_semantics<arbitrary>], iteration_bounds = array<i64: 2, 1>, scalar_prefetch = 0 : i64, scratch_operands = 0 : i64, tpu.core_type = #tpu.core_type<tc>, window_params = [{transform_indices = @transform_0, window_bounds = array<i64: 1, 4, 2, 128>}, {transform_indices = @transform_1, window_bounds = array<i64: 1, 4, 2, 128>}, {transform_indices = @transform_2, window_bounds = array<i64: 10, 1, 2, 128>}, {transform_indices = @transform_3, window_bounds = array<i64: 1, 2, 128>}, {transform_indices = @transform_4, window_bounds = array<i64: 1, 2, 128>}]} {
    %c0_i32 = arith.constant 0 : i32
    %0 = arith.cmpi eq, %arg1, %c0_i32 : i32
    %1 = arith.extui %0 : i1 to i32
    %c0_i32_0 = arith.constant 0 : i32
    %2 = arith.cmpi ne, %1, %c0_i32_0 : i32
    scf.if %2 {
      %cst = arith.constant 0.000000e+00 : f32
      %132 = vector.broadcast %cst : f32 to vector<1x2x128xf32>
      %c0_58 = arith.constant 0 : index
      %c0_59 = arith.constant 0 : index
      %c0_60 = arith.constant 0 : index
      %133 = vector.load %arg5[%c0_58, %c0_59, %c0_60] : memref<1x2x128xf32, #tpu.memory_space<vmem>>, vector<1x2x128xf32>
      tpu.vector_store %arg5[%c0_58, %c0_59, %c0_60], %132 {strides = array<i32>} : memref<1x2x128xf32, #tpu.memory_space<vmem>>, vector<1x2x128xf32>,
      %cst_61 = arith.constant 0.000000e+00 : f32
      %134 = vector.broadcast %cst_61 : f32 to vector<1x2x128xf32>
      %c0_62 = arith.constant 0 : index
      %c0_63 = arith.constant 0 : index
      %c0_64 = arith.constant 0 : index
      %135 = vector.load %arg6[%c0_62, %c0_63, %c0_64] : memref<1x2x128xf32, #tpu.memory_space<vmem>>, vector<1x2x128xf32>
      tpu.vector_store %arg6[%c0_62, %c0_63, %c0_64], %134 {strides = array<i32>} : memref<1x2x128xf32, #tpu.memory_space<vmem>>, vector<1x2x128xf32>,
    } else {
    }
    %c0 = arith.constant 0 : index
    %c0_1 = arith.constant 0 : index
    %c0_2 = arith.constant 0 : index
    %3 = vector.load %arg5[%c0, %c0_1, %c0_2] : memref<1x2x128xf32, #tpu.memory_space<vmem>>, vector<1x2x128xf32>
    %4 = vector.shape_cast %3 : vector<1x2x128xf32> to vector<2x128xf32>
    %c0_3 = arith.constant 0 : index
    %c0_4 = arith.constant 0 : index
    %c0_5 = arith.constant 0 : index
    %5 = vector.load %arg6[%c0_3, %c0_4, %c0_5] : memref<1x2x128xf32, #tpu.memory_space<vmem>>, vector<1x2x128xf32>
    %6 = vector.shape_cast %5 : vector<1x2x128xf32> to vector<2x128xf32>
    %c0_i32_6 = arith.constant 0 : i32
    %c2_i32 = arith.constant 2 : i32
    %7 = arith.muli %c0_i32_6, %c2_i32 : i32
    %c0_7 = arith.constant 0 : index
    %c0_8 = arith.constant 0 : index
    %8 = arith.index_cast %7 : i32 to index
    %c0_9 = arith.constant 0 : index
    %9 = vector.load %arg2[%c0_7, %c0_8, %8, %c0_9] : memref<1x4x2x128xf32, #tpu.memory_space<vmem>>, vector<1x1x2x128xf32>
    %10 = vector.shape_cast %9 : vector<1x1x2x128xf32> to vector<2x128xf32>
    %c0_10 = arith.constant 0 : index
    %c0_11 = arith.constant 0 : index
    %11 = arith.index_cast %7 : i32 to index
    %c0_12 = arith.constant 0 : index
    %12 = vector.load %arg3[%c0_10, %c0_11, %11, %c0_12] : memref<1x4x2x128xf32, #tpu.memory_space<vmem>>, vector<1x1x2x128xf32>
    %13 = vector.shape_cast %12 : vector<1x1x2x128xf32> to vector<2x128xf32>
    %14 = arith.subf %10, %13 : vector<2x128xf32>
    %c0_13 = arith.constant 0 : index
    %c1 = arith.constant 1 : index
    %15 = arith.index_cast %7 : i32 to index
    %c0_14 = arith.constant 0 : index
    %16 = vector.load %arg2[%c0_13, %c1, %15, %c0_14] : memref<1x4x2x128xf32, #tpu.memory_space<vmem>>, vector<1x1x2x128xf32>
    %17 = vector.shape_cast %16 : vector<1x1x2x128xf32> to vector<2x128xf32>
    %c0_15 = arith.constant 0 : index
    %c1_16 = arith.constant 1 : index
    %18 = arith.index_cast %7 : i32 to index
    %c0_17 = arith.constant 0 : index
    %19 = vector.load %arg3[%c0_15, %c1_16, %18, %c0_17] : memref<1x4x2x128xf32, #tpu.memory_space<vmem>>, vector<1x1x2x128xf32>
    %20 = vector.shape_cast %19 : vector<1x1x2x128xf32> to vector<2x128xf32>
    %21 = arith.subf %17, %20 : vector<2x128xf32>
    %c0_18 = arith.constant 0 : index
    %c2 = arith.constant 2 : index
    %22 = arith.index_cast %7 : i32 to index
    %c0_19 = arith.constant 0 : index
    %23 = vector.load %arg2[%c0_18, %c2, %22, %c0_19] : memref<1x4x2x128xf32, #tpu.memory_space<vmem>>, vector<1x1x2x128xf32>
    %24 = vector.shape_cast %23 : vector<1x1x2x128xf32> to vector<2x128xf32>
    %c0_20 = arith.constant 0 : index
    %c2_21 = arith.constant 2 : index
    %25 = arith.index_cast %7 : i32 to index
    %c0_22 = arith.constant 0 : index
    %26 = vector.load %arg3[%c0_20, %c2_21, %25, %c0_22] : memref<1x4x2x128xf32, #tpu.memory_space<vmem>>, vector<1x1x2x128xf32>
    %27 = vector.shape_cast %26 : vector<1x1x2x128xf32> to vector<2x128xf32>
    %28 = arith.subf %24, %27 : vector<2x128xf32>
    %c0_23 = arith.constant 0 : index
    %c3 = arith.constant 3 : index
    %29 = arith.index_cast %7 : i32 to index
    %c0_24 = arith.constant 0 : index
    %30 = vector.load %arg2[%c0_23, %c3, %29, %c0_24] : memref<1x4x2x128xf32, #tpu.memory_space<vmem>>, vector<1x1x2x128xf32>
    %31 = vector.shape_cast %30 : vector<1x1x2x128xf32> to vector<2x128xf32>
    %c0_25 = arith.constant 0 : index
    %c3_26 = arith.constant 3 : index
    %32 = arith.index_cast %7 : i32 to index
    %c0_27 = arith.constant 0 : index
    %33 = vector.load %arg3[%c0_25, %c3_26, %32, %c0_27] : memref<1x4x2x128xf32, #tpu.memory_space<vmem>>, vector<1x1x2x128xf32>
    %34 = vector.shape_cast %33 : vector<1x1x2x128xf32> to vector<2x128xf32>
    %35 = arith.subf %31, %34 : vector<2x128xf32>
    %c0_28 = arith.constant 0 : index
    %c0_29 = arith.constant 0 : index
    %36 = arith.index_cast %7 : i32 to index
    %c0_30 = arith.constant 0 : index
    %37 = vector.load %arg4[%c0_28, %c0_29, %36, %c0_30] : memref<10x1x2x128xf32, #tpu.memory_space<vmem>>, vector<1x1x2x128xf32>
    %38 = vector.shape_cast %37 : vector<1x1x2x128xf32> to vector<2x128xf32>
    %c1_31 = arith.constant 1 : index
    %c0_32 = arith.constant 0 : index
    %39 = arith.index_cast %7 : i32 to index
    %c0_33 = arith.constant 0 : index
    %40 = vector.load %arg4[%c1_31, %c0_32, %39, %c0_33] : memref<10x1x2x128xf32, #tpu.memory_space<vmem>>, vector<1x1x2x128xf32>
    %41 = vector.shape_cast %40 : vector<1x1x2x128xf32> to vector<2x128xf32>
    %c2_34 = arith.constant 2 : index
    %c0_35 = arith.constant 0 : index
    %42 = arith.index_cast %7 : i32 to index
    %c0_36 = arith.constant 0 : index
    %43 = vector.load %arg4[%c2_34, %c0_35, %42, %c0_36] : memref<10x1x2x128xf32, #tpu.memory_space<vmem>>, vector<1x1x2x128xf32>
    %44 = vector.shape_cast %43 : vector<1x1x2x128xf32> to vector<2x128xf32>
    %c3_37 = arith.constant 3 : index
    %c0_38 = arith.constant 0 : index
    %45 = arith.index_cast %7 : i32 to index
    %c0_39 = arith.constant 0 : index
    %46 = vector.load %arg4[%c3_37, %c0_38, %45, %c0_39] : memref<10x1x2x128xf32, #tpu.memory_space<vmem>>, vector<1x1x2x128xf32>
    %47 = vector.shape_cast %46 : vector<1x1x2x128xf32> to vector<2x128xf32>
    %c4 = arith.constant 4 : index
    %c0_40 = arith.constant 0 : index
    %48 = arith.index_cast %7 : i32 to index
    %c0_41 = arith.constant 0 : index
    %49 = vector.load %arg4[%c4, %c0_40, %48, %c0_41] : memref<10x1x2x128xf32, #tpu.memory_space<vmem>>, vector<1x1x2x128xf32>
    %50 = vector.shape_cast %49 : vector<1x1x2x128xf32> to vector<2x128xf32>
    %c5 = arith.constant 5 : index
    %c0_42 = arith.constant 0 : index
    %51 = arith.index_cast %7 : i32 to index
    %c0_43 = arith.constant 0 : index
    %52 = vector.load %arg4[%c5, %c0_42, %51, %c0_43] : memref<10x1x2x128xf32, #tpu.memory_space<vmem>>, vector<1x1x2x128xf32>
    %53 = vector.shape_cast %52 : vector<1x1x2x128xf32> to vector<2x128xf32>
    %c6 = arith.constant 6 : index
    %c0_44 = arith.constant 0 : index
    %54 = arith.index_cast %7 : i32 to index
    %c0_45 = arith.constant 0 : index
    %55 = vector.load %arg4[%c6, %c0_44, %54, %c0_45] : memref<10x1x2x128xf32, #tpu.memory_space<vmem>>, vector<1x1x2x128xf32>
    %56 = vector.shape_cast %55 : vector<1x1x2x128xf32> to vector<2x128xf32>
    %c7 = arith.constant 7 : index
    %c0_46 = arith.constant 0 : index
    %57 = arith.index_cast %7 : i32 to index
    %c0_47 = arith.constant 0 : index
    %58 = vector.load %arg4[%c7, %c0_46, %57, %c0_47] : memref<10x1x2x128xf32, #tpu.memory_space<vmem>>, vector<1x1x2x128xf32>
    %59 = vector.shape_cast %58 : vector<1x1x2x128xf32> to vector<2x128xf32>
    %c8 = arith.constant 8 : index
    %c0_48 = arith.constant 0 : index
    %60 = arith.index_cast %7 : i32 to index
    %c0_49 = arith.constant 0 : index
    %61 = vector.load %arg4[%c8, %c0_48, %60, %c0_49] : memref<10x1x2x128xf32, #tpu.memory_space<vmem>>, vector<1x1x2x128xf32>
    %62 = vector.shape_cast %61 : vector<1x1x2x128xf32> to vector<2x128xf32>
    %c9 = arith.constant 9 : index
    %c0_50 = arith.constant 0 : index
    %63 = arith.index_cast %7 : i32 to index
    %c0_51 = arith.constant 0 : index
    %64 = vector.load %arg4[%c9, %c0_50, %63, %c0_51] : memref<10x1x2x128xf32, #tpu.memory_space<vmem>>, vector<1x1x2x128xf32>
    %65 = vector.shape_cast %64 : vector<1x1x2x128xf32> to vector<2x128xf32>
    %66 = math.rsqrt %38 : vector<2x128xf32>
    %67 = arith.mulf %41, %66 : vector<2x128xf32>
    %68 = arith.mulf %47, %66 : vector<2x128xf32>
    %69 = arith.mulf %56, %66 : vector<2x128xf32>
    %70 = arith.mulf %67, %67 : vector<2x128xf32>
    %71 = arith.subf %44, %70 : vector<2x128xf32>
    %72 = math.rsqrt %71 : vector<2x128xf32>
    %73 = arith.mulf %38, %71 : vector<2x128xf32>
    %74 = arith.mulf %68, %67 : vector<2x128xf32>
    %75 = arith.subf %50, %74 : vector<2x128xf32>
    %76 = arith.mulf %75, %72 : vector<2x128xf32>
    %77 = arith.mulf %69, %67 : vector<2x128xf32>
    %78 = arith.subf %59, %77 : vector<2x128xf32>
    %79 = arith.mulf %78, %72 : vector<2x128xf32>
    %80 = arith.mulf %68, %68 : vector<2x128xf32>
    %81 = arith.subf %53, %80 : vector<2x128xf32>
    %82 = arith.mulf %76, %76 : vector<2x128xf32>
    %83 = arith.subf %81, %82 : vector<2x128xf32>
    %84 = math.rsqrt %83 : vector<2x128xf32>
    %85 = arith.mulf %73, %83 : vector<2x128xf32>
    %86 = arith.mulf %69, %68 : vector<2x128xf32>
    %87 = arith.subf %62, %86 : vector<2x128xf32>
    %88 = arith.mulf %79, %76 : vector<2x128xf32>
    %89 = arith.subf %87, %88 : vector<2x128xf32>
    %90 = arith.mulf %89, %84 : vector<2x128xf32>
    %91 = arith.mulf %69, %69 : vector<2x128xf32>
    %92 = arith.subf %65, %91 : vector<2x128xf32>
    %93 = arith.mulf %79, %79 : vector<2x128xf32>
    %94 = arith.subf %92, %93 : vector<2x128xf32>
    %95 = arith.mulf %90, %90 : vector<2x128xf32>
    %96 = arith.subf %94, %95 : vector<2x128xf32>
    %97 = math.rsqrt %96 : vector<2x128xf32>
    %98 = arith.mulf %85, %96 : vector<2x128xf32>
    %99 = arith.mulf %14, %66 : vector<2x128xf32>
    %100 = arith.mulf %99, %99 : vector<2x128xf32>
    %101 = arith.mulf %67, %99 : vector<2x128xf32>
    %102 = arith.subf %21, %101 : vector<2x128xf32>
    %103 = arith.mulf %102, %72 : vector<2x128xf32>
    %104 = arith.mulf %103, %103 : vector<2x128xf32>
    %105 = arith.addf %100, %104 : vector<2x128xf32>
    %106 = arith.mulf %68, %99 : vector<2x128xf32>
    %107 = arith.subf %28, %106 : vector<2x128xf32>
    %108 = arith.mulf %76, %103 : vector<2x128xf32>
    %109 = arith.subf %107, %108 : vector<2x128xf32>
    %110 = arith.mulf %109, %84 : vector<2x128xf32>
    %111 = arith.mulf %110, %110 : vector<2x128xf32>
    %112 = arith.addf %105, %111 : vector<2x128xf32>
    %113 = arith.mulf %69, %99 : vector<2x128xf32>
    %114 = arith.subf %35, %113 : vector<2x128xf32>
    %115 = arith.mulf %79, %103 : vector<2x128xf32>
    %116 = arith.subf %114, %115 : vector<2x128xf32>
    %117 = arith.mulf %90, %110 : vector<2x128xf32>
    %118 = arith.subf %116, %117 : vector<2x128xf32>
    %119 = arith.mulf %118, %97 : vector<2x128xf32>
    %120 = arith.mulf %119, %119 : vector<2x128xf32>
    %121 = arith.addf %112, %120 : vector<2x128xf32>
    %122 = math.log %98 : vector<2x128xf32>
    %123 = arith.addf %121, %122 : vector<2x128xf32>
    %124 = arith.addf %4, %123 : vector<2x128xf32>
    %125 = arith.maximumf %6, %121 : vector<2x128xf32>
    %c1_i32 = arith.constant 1 : i32
    %c0_52 = arith.constant 0 : index
    %c0_53 = arith.constant 0 : index
    %c0_54 = arith.constant 0 : index
    %126 = vector.load %arg5[%c0_52, %c0_53, %c0_54] : memref<1x2x128xf32, #tpu.memory_space<vmem>>, vector<1x2x128xf32>
    %127 = vector.shape_cast %126 : vector<1x2x128xf32> to vector<2x128xf32>
    %128 = vector.shape_cast %124 : vector<2x128xf32> to vector<1x2x128xf32>
    tpu.vector_store %arg5[%c0_52, %c0_53, %c0_54], %128 {strides = array<i32>} : memref<1x2x128xf32, #tpu.memory_space<vmem>>, vector<1x2x128xf32>,
    %c0_55 = arith.constant 0 : index
    %c0_56 = arith.constant 0 : index
    %c0_57 = arith.constant 0 : index
    %129 = vector.load %arg6[%c0_55, %c0_56, %c0_57] : memref<1x2x128xf32, #tpu.memory_space<vmem>>, vector<1x2x128xf32>
    %130 = vector.shape_cast %129 : vector<1x2x128xf32> to vector<2x128xf32>
    %131 = vector.shape_cast %125 : vector<2x128xf32> to vector<1x2x128xf32>
    tpu.vector_store %arg6[%c0_55, %c0_56, %c0_57], %131 {strides = array<i32>} : memref<1x2x128xf32, #tpu.memory_space<vmem>>, vector<1x2x128xf32>,
    return
  }
  func.func @transform_0(%arg0: i32, %arg1: i32) -> (i32, i32, i32, i32) {
    %c0_i32 = arith.constant 0 : i32
    %c0_i32_0 = arith.constant 0 : i32
    %c0_i32_1 = arith.constant 0 : i32
    return %arg0, %c0_i32, %arg1, %c0_i32_0 : i32, i32, i32, i32
  }
  func.func @transform_1(%arg0: i32, %arg1: i32) -> (i32, i32, i32, i32) {
    %c0_i32 = arith.constant 0 : i32
    %c0_i32_0 = arith.constant 0 : i32
    %c0_i32_1 = arith.constant 0 : i32
    return %arg0, %c0_i32, %arg1, %c0_i32_0 : i32, i32, i32, i32
  }
  func.func @transform_2(%arg0: i32, %arg1: i32) -> (i32, i32, i32, i32) {
    %c0_i32 = arith.constant 0 : i32
    %c0_i32_0 = arith.constant 0 : i32
    %c0_i32_1 = arith.constant 0 : i32
    return %c0_i32, %arg0, %arg1, %c0_i32_0 : i32, i32, i32, i32
  }
  func.func @transform_3(%arg0: i32, %arg1: i32) -> (i32, i32, i32) {
    %c0_i32 = arith.constant 0 : i32
    %c0_i32_0 = arith.constant 0 : i32
    %c0_i32_1 = arith.constant 0 : i32
    return %arg0, %c0_i32, %c0_i32_0 : i32, i32, i32
  }
  func.func @transform_4(%arg0: i32, %arg1: i32) -> (i32, i32, i32) {
    %c0_i32 = arith.constant 0 : i32
    %c0_i32_0 = arith.constant 0 : i32
    %c0_i32_1 = arith.constant 0 : i32
    return %arg0, %c0_i32, %c0_i32_0 : i32, i32, i32
  }
}

</mosaic_0001>

<bundles_post_ra>
// kernel: map_loss_pretrain.1
= control target key start
LH: loop header
LB: loop body
LE: loop exit
PB: predicated region body
PF: predicated region fallthrough
CT: control target
= control target key end

     0   :  { %s754_s15 = smov 0   ;;  %s756_s16 = smov 0   ;;  %s867_s0 = inlined_call_operand.vmem [shape: f32[2,4,2,128], index: 0, kind: input, shape index: {}]   ;;  %s868_s1 = inlined_call_operand.vmem [shape: f32[2,4,2,128], index: 1, kind: input, shape index: {}]   ;;  %s869_s2 = inlined_call_operand.vmem [shape: f32[10,2,2,128], index: 2, kind: input, shape index: {}]   ;;  %s870_s3 = inlined_call_operand.vmem [shape: f32[2,2,128], index: 3, kind: output, shape index: {0}]   ;;  %s871_s4 = inlined_call_operand.vmem [shape: f32[2,2,128], index: 4, kind: output, shape index: {1}]  }
   0x1   :  { %s758_s17 = smov 0   ;;  %s760_s18 = smov 0  }
   0x2   :  { %s762_s19 = smov 0  }
   0x3 LB: > { %s27_s20 = sadd.s32 1, %s722_s18  ;;  %p99_p1 = scmp.ne.s32.totalorder %s714_s16, %s710_s15  ;;  %s726_s19 = sphi %s762_s19, %s15_s19   ;;  %s722_s18 = sphi %s760_s18, %s875_s18   ;;  %s718_s17 = sphi %s758_s17, %s874_s17   ;;  %s714_s16 = sphi %s756_s16, %s873_s16   ;;  %s710_s15 = sphi %s754_s15, %s872_s15  }
   0x4   : > { %p29_p0 = scmp.ge.s32.totalorder %s27_s20, 2  ;;  %p100_p2 = scmp.eq.s32.totalorder %s726_s19, 0 }
   0x5   : > { %s92_s22 = sadd.s32 1, %s714_s16  ;;  %p607_p5 = scmp.ge.s32.totalorder %s726_s19, 2 }
   0x6   : > { %s877_s20 = smov (%p29_p0, %s27_s20), 0  ;;  %p101_p3 = por %p100_p2, %p99_p1 }
   0x7   : > { %s87_s21 = ssub.s32 %s722_s18, %s877_s20  ;;  %177 = sbr.rel (%p607_p5) target bundleno = 25 (0x19), region = 16 }
   0x8   : > { %p90_p4 = scmp.eq.s32.totalorder %s87_s21, 0 }
   0xa   : > { %s789_s23 = scalar_select %p90_p4, %s714_s16, %s92_s22  }
   0xe   : > { %202 = sbr.rel (!%p101_p3) target bundleno = 25 (0x19), region = 28  ;;  %s204_s24 = sand.u32 (%p101_p3), 1, %s714_s16  }
   0xf   : > { %s608_s25 = sshll.u32 (%p101_p3), %s722_s18, 1  ;;  %s635_s26 = smul.u32 (%p101_p3), 20, %s204_s24 }
  0x10   : > { %s209_s29 = scalar_lea.vmem (%p101_p3), %s869_s2, %s608_s25 }
  0x11   : > { %v225_v0 = vld [vmem:[%s209_s29] sm:$0x3] (%p101_p3)  ;;  %v227_v1 = vld [vmem:[%s209_s29 + $0x4] sm:$0x3] (%p101_p3)  ;;  %v229_v2 = vld [vmem:[%s209_s29 + $0x8] sm:$0x3] (%p101_p3) }
  0x12   : > { %v231_v3 = vld [vmem:[%s209_s29 + $0xc] sm:$0x3] (%p101_p3)  ;;  %v233_v4 = vld [vmem:[%s209_s29 + $0x10] sm:$0x3] (%p101_p3)  ;;  %s206_s30 = scalar_lea.vmem (%p101_p3), [#allocation2], %s635_s26 }
  0x13   : > { %226 = vst [vmem:[%s206_s30] sm:$0x3] (%p101_p3), %v225_v0  ;;  %228 = vst [vmem:[%s206_s30 + $0x2] sm:$0x3] (%p101_p3), %v227_v1  ;;  %v235_v5 = vld [vmem:[%s209_s29 + $0x14] sm:$0x3] (%p101_p3) }
  0x14   : > { %230 = vst [vmem:[%s206_s30 + $0x4] sm:$0x3] (%p101_p3), %v229_v2  ;;  %232 = vst [vmem:[%s206_s30 + $0x6] sm:$0x3] (%p101_p3), %v231_v3  ;;  %v237_v6 = vld [vmem:[%s209_s29 + $0x18] sm:$0x3] (%p101_p3) }
  0x15   : > { %234 = vst [vmem:[%s206_s30 + $0x8] sm:$0x3] %v233_v4  ;;  %v239_v7 = vld [vmem:[%s209_s29 + $0x1c] sm:$0x3]  ;;  %236 = vst [vmem:[%s206_s30 + $0xa] sm:$0x3] %v235_v5 }
  0x16   : > { %238 = vst [vmem:[%s206_s30 + $0xc] sm:$0x3] %v237_v6  ;;  %240 = vst [vmem:[%s206_s30 + $0xe] sm:$0x3] %v239_v7  ;;  %v241_v8 = vld [vmem:[%s209_s29 + $0x20] sm:$0x3] }
  0x17   : > { %v243_v9 = vld [vmem:[%s209_s29 + $0x24] sm:$0x3]  ;;  %242 = vst [vmem:[%s206_s30 + $0x10] sm:$0x3] %v241_v8 }
  0x18   : > { %244 = vst [vmem:[%s206_s30 + $0x12] sm:$0x3] %v243_v9 }
  0x19 PF: > { %p609_p6 = scmp.ge.s32.totalorder %s726_s19, 1  ;;  %p286_p7 = scmp.lt.s32.totalorder %s726_s19, 3 }
  0x1b   : > { %p287_p8 = pnand %p609_p6, %p286_p7 }
  0x1c   : > { %s293_s5 = sand.u32 (!%p287_p8), 1, %s710_s15   ;;  %p337_p9 = scmp.lt.s32.totalorder (!%p287_p8), %s718_s17, 1  ;;  %v728_v11 = vmov (!%p287_p8), 0.0  }
  0x1d   : > { %290 = sbr.rel (%p287_p8) target bundleno = 107 (0x6b), region = 69 }
  0x1e   : > { %s636_s6 = smul.u32 (!%p287_p8), 20, %s293_s5 }
  0x20   : > { %s802_s8 = scalar_lea.vmem (!%p287_p8), [#allocation2], %s636_s6 }
  0x21   : > { %v805_v10 = vld [vmem:[%s802_s8] sm:$0x3] (!%p287_p8)  ;;  %v622_v12 = vld [vmem:[%s802_s8 + $0x2] sm:$0x3] (!%p287_p8)  ;;  %v623_v15 = vld [vmem:[%s802_s8 + $0x4] sm:$0x3] (!%p287_p8) }
  0x22   : > { %678 = vrsqrt.f32 (!%p287_p8), %v805_v10  ;;  %v624_v16 = vld [vmem:[%s802_s8 + $0x6] sm:$0x3] (!%p287_p8)  ;;  %v627_v20 = vld [vmem:[%s802_s8 + $0xc] sm:$0x3] (!%p287_p8)  ;;  %v625_v25 = vld [vmem:[%s802_s8 + $0x8] sm:$0x3] (!%p287_p8) }
  0x23   : > { %v626_v29 = vld [vmem:[%s802_s8 + $0xa] sm:$0x3] (!%p287_p8)  ;;  %v628_v32 = vld [vmem:[%s802_s8 + $0xe] sm:$0x3] (!%p287_p8)  ;;  %v629_v46 = vld [vmem:[%s802_s8 + $0x10] sm:$0x3] (!%p287_p8) }
  0x24   : > { %s879_s17 = smov (!%p337_p9, %s718_s17), 1  ;;  %v630_v55 = vld [vmem:[%s802_s8 + $0x12] sm:$0x3] }
  0x25   : > { %s614_s7 = sshll.u32 %s879_s17, 1  ;;  %s633_s15 = sshll.u32 %s879_s17, 3 }
  0x26   : > { %s811_s11 = scalar_lea.vmem %s870_s3, %s614_s7  ;;  %s816_s14 = scalar_lea.vmem %s871_s4, %s614_s7 }
  0x27   : > { %365 = vst [vmem:[%s811_s11] sm:$0x3] %v728_v11  ;;  %366 = vst [vmem:[%s816_s14] sm:$0x3] %v728_v11  ;;  %s826_s24 = scalar_lea.vmem %s867_s0, %s633_s15  ;;  %s831_s27 = scalar_lea.vmem %s868_s1, %s633_s15 }
  0x28   : > { %v369_v21 = vld [vmem:[%s826_s24] sm:$0x3]  ;;  %v616_v34 = vld [vmem:[%s826_s24 + $0x2] sm:$0x3]  ;;  %v618_v47 = vld [vmem:[%s826_s24 + $0x4] sm:$0x3] }
  0x29   : > { %v370_v22 = vld [vmem:[%s831_s27] sm:$0x3]  ;;  %v617_v35 = vld [vmem:[%s831_s27 + $0x2] sm:$0x3]  ;;  %v619_v48 = vld [vmem:[%s831_s27 + $0x4] sm:$0x3] }
  0x2a   : > { %v371_v26 = vsub.f32 %v369_v21, %v370_v22  ;;  %v376_v39 = vsub.f32 %v616_v34, %v617_v35  ;;  %v381_v52 = vsub.f32 %v618_v47, %v619_v48  ;;  %v620_v61 = vld [vmem:[%s826_s24 + $0x6] sm:$0x3] }
  0x2b   : > { %v621_v62 = vld [vmem:[%s831_s27 + $0x6] sm:$0x3] }
  0x2c   : > { %v679_v13 = vpop.eup %678  ;;  %v386_v3 = vsub.f32 %v620_v61, %v621_v62 }
  0x2d   : > { %v407_v14 = vmul.f32 %v679_v13, %v622_v12  ;;  %v408_v19 = vmul.f32 %v679_v13, %v624_v16  ;;  %v409_v24 = vmul.f32 %v679_v13, %v627_v20  ;;  %v439_v31 = vmul.f32 %v679_v13, %v371_v26 }
  0x2e   : > { %v368_v26 = vld [vmem:[%s816_s14] sm:$0x3] }
  0x2f   : > { %v410_v17 = vmul.f32 %v407_v14, %v407_v14  ;;  %v414_v23 = vmul.f32 %v408_v19, %v407_v14  ;;  %v420_v28 = vmul.f32 %v408_v19, %v408_v19  ;;  %v417_v30 = vmul.f32 %v409_v24, %v407_v14 }
  0x30   : > { %v441_v40 = vmul.f32 %v439_v31, %v407_v14  ;;  %v426_v44 = vmul.f32 %v409_v24, %v408_v19  ;;  %v431_v51 = vmul.f32 %v409_v24, %v409_v24  ;;  %v446_v54 = vmul.f32 %v439_v31, %v408_v19 }
  0x31   : > { %v411_v18 = vsub.f32 %v623_v15, %v410_v17  ;;  %v415_v27 = vsub.f32 %v625_v25, %v414_v23  ;;  %v421_v37 = vsub.f32 %v626_v29, %v420_v28  ;;  %v418_v38 = vsub.f32 %v628_v32, %v417_v30  ;;  %v367_v28 = vld [vmem:[%s811_s11] sm:$0x3] }
  0x32   : > { %v442_v45 = vsub.f32 %v376_v39, %v441_v40  ;;  %v427_v49 = vsub.f32 %v629_v46, %v426_v44  ;;  %v432_v57 = vsub.f32 %v630_v55, %v431_v51  ;;  %v447_v59 = vsub.f32 %v381_v52, %v446_v54 }
  0x33   : > { %680 = vrsqrt.f32 %v411_v18  ;;  %v413_v63 = vmul.f32 %v411_v18, %v805_v10  ;;  %v453_v4 = vmul.f32 %v439_v31, %v409_v24  ;;  %v440_v14 = vmul.f32 %v439_v31, %v439_v31 }
  0x35   : > { %v454_v9 = vsub.f32 %v386_v3, %v453_v4 }
  0x3d   : > { %v681_v33 = vpop.eup %680 }
  0x3e   : > { %v416_v36 = vmul.f32 %v681_v33, %v415_v27  ;;  %v419_v43 = vmul.f32 %v681_v33, %v418_v38  ;;  %v443_v53 = vmul.f32 %v681_v33, %v442_v45 }
  0x40   : > { %v422_v41 = vmul.f32 %v416_v36, %v416_v36  ;;  %v428_v50 = vmul.f32 %v419_v43, %v416_v36  ;;  %v433_v58 = vmul.f32 %v419_v43, %v419_v43  ;;  %v448_v60 = vmul.f32 %v443_v53, %v416_v36 }
  0x41   : > { %v455_v12 = vmul.f32 %v443_v53, %v419_v43  ;;  %v444_v15 = vmul.f32 %v443_v53, %v443_v53 }
  0x42   : > { %v423_v42 = vsub.f32 %v421_v37, %v422_v41  ;;  %v429_v56 = vsub.f32 %v427_v49, %v428_v50  ;;  %v434_v2 = vsub.f32 %v432_v57, %v433_v58  ;;  %v449_v5 = vsub.f32 %v447_v59, %v448_v60 }
  0x43   : > { %v456_v10 = vsub.f32 %v454_v9, %v455_v12  ;;  %v445_v17 = vadd.f32 %v444_v15, %v440_v14 }
  0x44   : > { %682 = vrsqrt.f32 %v423_v42  ;;  %v425_v6 = vmul.f32 %v423_v42, %v413_v63 }
  0x4e   : > { %v683_v0 = vpop.eup %682 }
  0x4f   : > { %v430_v1 = vmul.f32 %v683_v0, %v429_v56  ;;  %v450_v11 = vmul.f32 %v683_v0, %v449_v5 }
  0x51   : > { %v435_v7 = vmul.f32 %v430_v1, %v430_v1  ;;  %v457_v16 = vmul.f32 %v450_v11, %v430_v1  ;;  %v451_v18 = vmul.f32 %v450_v11, %v450_v11 }
  0x53   : > { %v436_v8 = vsub.f32 %v434_v2, %v435_v7  ;;  %v458_v19 = vsub.f32 %v456_v10, %v457_v16  ;;  %v452_v21 = vadd.f32 %v451_v18, %v445_v17 }
  0x55   : > { %684 = vrsqrt.f32 %v436_v8  ;;  %v438_v13 = vmul.f32 %v436_v8, %v425_v6 }
  0x57   : > { %686 = vlog2.f32 %v438_v13 }
  0x5f   : > { %v685_v20 = vpop.eup %684 }
  0x60   : > { %v459_v22 = vmul.f32 %v685_v20, %v458_v19 }
  0x61   : > { %v687_v23 = vpop.eup %686 }
  0x62   : > { %v460_v24 = vmul.f32 %v459_v22, %v459_v22  ;;  %v463_v25 = vmul.f32 0.6931472, %v687_v23 }
  0x64   : > { %v461_v27 = vadd.f32 %v460_v24, %v452_v21 }
  0x66   : > { %v464_v29 = vadd.f32 %v463_v25, %v461_v27  ;;  %v466_v30 = vmax.f32 %v368_v26, %v461_v27 }
  0x68   : > { %v465_v31 = vadd.f32 %v464_v29, %v367_v28  ;;  %468 = vst [vmem:[%s816_s14] sm:$0x3] %v466_v30 }
  0x6a   : > { %467 = vst [vmem:[%s811_s11] sm:$0x3] %v465_v31 }
  0x6b PF: > { %s15_s19 = sadd.s32 1, %s726_s19   ;;  %s872_s15 = smov %s714_s16 }
  0x6c   : > { %p12_p10 = scmp.ge.s32.totalorder %s15_s19, 4   ;;  %s873_s16 = smov %s789_s23 }
  0x6d   : > { %s874_s17 = smov %s722_s18  ;;  %s875_s18 = smov %s877_s20 }
  0x6e   :  { %14 = sbr.rel (!%p12_p10) target bundleno = 3 (0x3), region = 145 }

</bundles_post_ra>
